<compile_context>
chip_gen: v7x
topology: tpu7x:2x2x1
jax: 0.10.0
libtpu: 0.0.40
codegen_flags: <defaults>
</compile_context>

<pallas_src>
import functools

import jax
import jax.numpy as jnp
from jax import lax
from jax.experimental import pallas as pl
from jax.experimental.pallas import tpu as pltpu


def _ntxent_kernel(x_ref, xneg_ref, s_ref, out_ref, acc_ref, *,
                   inv_scale, eps, n_pad):
    # x_ref:    (tE, D)   rows of the local sample for this E tile (native dtype)
    # xneg_ref: (tN, D)   tile of the (padded) gathered negatives (native dtype)
    # s_ref:    (1, D)    column-sum of the local sample (for the "pos" term)
    # out_ref:  (1, tE)   per-row  log(neg+eps) - log(pos)   (lane-dense)
    # acc_ref:  (1, tE)   f32 running sum of exp(cov * inv_scale) over negatives
    k = pl.program_id(1)

    @pl.when(k == 0)
    def _():
        acc_ref[...] = jnp.zeros_like(acc_ref)

    # cov tile = x_neg_tile @ x_tile.T (contract on D); native-dtype operands
    # straight to the MXU, f32 accumulation.  Shape (tN, tE).
    cov = lax.dot_general(xneg_ref[...], x_ref[...], (((1,), (1,)), ((), ())),
                          preferred_element_type=jnp.float32)
    sim = jnp.exp(cov * inv_scale)                          # EUP
    acc_ref[...] += jnp.sum(sim, axis=0, keepdims=True)     # sublane reduce -> (1, tE)

    @pl.when(k == pl.num_programs(1) - 1)
    def _():
        # log(pos_i) = (x_i . sum_j x_j) * inv_scale  (analytic; no exp/log round
        # trip, no (tE, E) intermediate).  (1, D) x (D, tE) -> (1, tE).
        log_pos = lax.dot_general(s_ref[...], x_ref[...],
                                  (((1,), (1,)), ((), ())),
                                  preferred_element_type=jnp.float32) * inv_scale
        # Padded (all-zero) negative rows each contributed exp(0) == 1 exactly;
        # remove them before the clamp.
        neg = jnp.maximum(acc_ref[...] - n_pad, eps)         # torch.clamp(min=eps)
        out_ref[...] = jnp.log(neg + eps) - log_pos


def _cdiv(a, b):
    return -(-a // b)


def _round_up(n, m):
    return ((n + m - 1) // m) * m


def _sublane_multiple(dtype):
    # packed-sublane layout multiple per element width: f32 -> 8, bf16 -> 16, int8/fp8 -> 32
    return {1: 32, 2: 16, 4: 8}.get(jnp.dtype(dtype).itemsize, 8)


def _choose_e_tiling(E, requested, sub):
    """Pick (tE, E_pad).

    The lane-dense (1, tE) output block requires tE to be a multiple of 128 or
    to cover the whole (padded) E axis.  For E > 128 we also keep >= 2 entries
    on the "parallel" grid axis so both v7x TensorCores get work.
    """
    if E <= 128:
        tE = _round_up(E, sub)
        return tE, tE                                   # single tile
    req = max(128, min(int(requested), _round_up(E, 128)))
    n_tiles = max(2, _cdiv(E, req))
    tE = _round_up(_cdiv(E, n_tiles), 128)
    return tE, _round_up(E, tE)


def _choose_n_tiling(N, requested, sub):
    """Pick (tN, N_pad); 128-aligned when N allows (native MXU edge, v5e)."""
    req = max(sub, min(int(requested), _round_up(N, sub)))
    if N >= 128 and req >= 128:
        tN = (req // 128) * 128
    else:
        tN = _round_up(req, sub)
    return tN, _round_up(N, tN)


def sequence_ntxent_loss(x, x_neg, *, temperature, eps=1e-6,
                         tile_e=256, tile_n=512):
    """Pallas SequenceNTXentLoss.

    x:     (E, D)  local contrastive-head output (squeezed from [1, E, D])
    x_neg: (N, D)  concatenated negatives gathered from the other ranks
    """
    E, D = x.shape
    N, Dn = x_neg.shape
    assert D == Dn

    sub = _sublane_multiple(x.dtype)
    tE, E_pad = _choose_e_tiling(E, tile_e, sub)
    tN, N_pad = _choose_n_tiling(N, tile_n, sub)
    n_pad = N_pad - N

    # Zero-pad (padded x rows only produce extra output columns that the mean
    # below ignores; padded x_neg rows are corrected exactly in the kernel).
    x_p = x if E_pad == E else jnp.pad(x, ((0, E_pad - E), (0, 0)))
    xneg_p = x_neg if n_pad == 0 else jnp.pad(x_neg, ((0, n_pad), (0, 0)))

    # Column-sum of the *original* rows (f32 accumulation, back to input dtype
    # so the epilogue dot stays on the native MXU path).
    s = jnp.sum(x.astype(jnp.float32), axis=0, keepdims=True).astype(x.dtype)

    inv_scale = 1.0 / (float(N) * float(temperature))
    kernel = functools.partial(_ntxent_kernel, inv_scale=inv_scale,
                               eps=float(eps), n_pad=float(n_pad))

    # Explicit VMEM budget: double-buffered input blocks + output + scratch,
    # with 2x headroom, capped at 64 MiB so the same sizing fits v7x.
    itemsize = jnp.dtype(x.dtype).itemsize
    need = 2 * (tE * D + tN * D + D) * itemsize + 2 * E_pad * 4 + 8 * tE * 4
    vmem_limit = int(min(64 << 20, max(32 << 20, 2 * need)))

    per_row = pl.pallas_call(
        kernel,
        out_shape=jax.ShapeDtypeStruct((1, E_pad), jnp.float32),
        grid_spec=pltpu.PrefetchScalarGridSpec(
            num_scalar_prefetch=0,
            grid=(E_pad // tE, N_pad // tN),
            in_specs=[
                pl.BlockSpec((tE, D), lambda i, k: (i, 0)),   # x rows (this tile)
                pl.BlockSpec((tN, D), lambda i, k: (k, 0)),   # negatives (reduced)
                pl.BlockSpec((1, D), lambda i, k: (0, 0)),    # column-sum vector
            ],
            out_specs=pl.BlockSpec((1, tE), lambda i, k: (0, i)),
            scratch_shapes=[pltpu.VMEM((1, tE), jnp.float32)],
        ),
        compiler_params=pltpu.CompilerParams(
            dimension_semantics=("parallel", "arbitrary"),
            vmem_limit_bytes=vmem_limit),
    )(x_p, xneg_p, s)

    # mean_i( log(neg_i+eps) - log(pos_i) )  ==  -log(pos/(neg+eps)).mean()
    return jnp.mean(per_row[0, :E])


def _sequence_ntxent_reference(x_local, x_dist, rank, temperature, eps=1e-6):
    """Pure-JAX mirror of the PyTorch forward, for verification."""
    x_neg = jnp.concatenate(
        [t for i, t in enumerate(x_dist) if i != rank], axis=1)
    x_neg = jnp.squeeze(x_neg, axis=0)                   # (N, D)
    x = jnp.squeeze(x_local, axis=0)                     # (E, D)
    n = x_neg.shape[0]
    cov = x @ x_neg.T
    sim = jnp.exp(cov / n / temperature)
    neg = jnp.maximum(sim.sum(-1), eps)                  # clamp(min=eps)
    neg = neg[:, None]                                   # (E, 1)
    pos = jnp.exp(jnp.sum(x @ x.T, axis=-1) / n / temperature)   # (E,)
    loss = -jnp.log(pos / (neg + eps)).mean()            # broadcast (E, E) mean
    return loss


if __name__ == "__main__":
    key = jax.random.PRNGKey(0)
    world_size, rank = 3, 0
    B, E, D = 1, 20, 128
    temperature = 0.1
    eps = 1e-6

    # Stand-in for torch.distributed all_gather: one [1, E, D] sample per rank.
    keys = jax.random.split(key, world_size)
    x_dist = [0.1 * jax.random.normal(k, (B, E, D), dtype=jnp.float32)
              for k in keys]
    x_local = x_dist[rank]
    x_neg = jnp.concatenate(
        [t for i, t in enumerate(x_dist) if i != rank], axis=1)[0]   # (40, 128)
    x = x_local[0]                                                   # (20, 128)

    # Small tile_n so the demo exercises the multi-step reduction, the
    # accumulator init/finalize path, and the N/E padding corrections.
    out = sequence_ntxent_loss(x, x_neg, temperature=temperature, eps=eps,
                               tile_e=256, tile_n=16)
    out = jax.block_until_ready(out)

    ref = _sequence_ntxent_reference(x_local, x_dist, rank, temperature, eps)
    assert jnp.allclose(out, ref, atol=1e-4, rtol=1e-4), (out, ref)

    print("KERNEL_OK")
</pallas_src>

<mosaic_0001>
module attributes {stable_mosaic.version = 11 : i64} {
  func.func @_ntxent_kernel(%arg0: i32, %arg1: i32, %arg2: memref<24x128xf32, #tpu.memory_space<vmem>>, %arg3: memref<16x128xf32, #tpu.memory_space<vmem>>, %arg4: memref<1x128xf32, #tpu.memory_space<vmem>>, %arg5: memref<1x24xf32, #tpu.memory_space<vmem>>, %arg6: memref<1x24xf32, #tpu.memory_space<vmem>>) attributes {dimension_semantics = [#tpu.dimension_semantics<parallel>, #tpu.dimension_semantics<arbitrary>], iteration_bounds = array<i64: 1, 3>, scalar_prefetch = 0 : i64, scratch_operands = 1 : i64, tpu.core_type = #tpu.core_type<tc>, window_params = [{transform_indices = @transform_0, window_bounds = array<i64: 24, 128>}, {transform_indices = @transform_1, window_bounds = array<i64: 16, 128>}, {pipeline_mode = #tpu.pipeline_mode<synchronous>, transform_indices = @transform_2, window_bounds = array<i64: 1, 128>}, {transform_indices = @transform_3, window_bounds = array<i64: 1, 24>}]} {
    %c0_i32 = arith.constant 0 : i32
    %0 = arith.cmpi eq, %arg1, %c0_i32 : i32
    %1 = arith.extui %0 : i1 to i32
    %c0_i32_0 = arith.constant 0 : i32
    %2 = arith.cmpi ne, %1, %c0_i32_0 : i32
    scf.if %2 {
      %cst_11 = arith.constant 0.000000e+00 : f32
      %17 = vector.broadcast %cst_11 : f32 to vector<1x24xf32>
      %c0_12 = arith.constant 0 : index
      %c0_13 = arith.constant 0 : index
      %18 = vector.load %arg6[%c0_12, %c0_13] : memref<1x24xf32, #tpu.memory_space<vmem>>, vector<1x24xf32>
      tpu.vector_store %arg6[%c0_12, %c0_13], %17 {strides = array<i32>} : memref<1x24xf32, #tpu.memory_space<vmem>>, vector<1x24xf32>,
    } else {
    }
    %c0 = arith.constant 0 : index
    %c0_1 = arith.constant 0 : index
    %3 = vector.load %arg3[%c0, %c0_1] : memref<16x128xf32, #tpu.memory_space<vmem>>, vector<16x128xf32>
    %c0_2 = arith.constant 0 : index
    %c0_3 = arith.constant 0 : index
    %4 = vector.load %arg2[%c0_2, %c0_3] : memref<24x128xf32, #tpu.memory_space<vmem>>, vector<24x128xf32>
    %cst = arith.constant dense<0.000000e+00> : vector<16x24xf32>
    %5 = tpu.matmul %3, %4, %cst {dimension_numbers = #tpu.dot_dimension_numbers<[1], [1], [0], [0], [0, 0, 1, 0], [], []>} : vector<16x128xf32>, vector<24x128xf32>, vector<16x24xf32> -> vector<16x24xf32>
    %cst_4 = arith.constant 2.500000e-01 : f32
    %6 = vector.broadcast %cst_4 : f32 to vector<16x24xf32>
    %7 = arith.mulf %5, %6 : vector<16x24xf32>
    %8 = math.exp %7 : vector<16x24xf32>
    %c0_5 = arith.constant 0 : index
    %c0_6 = arith.constant 0 : index
    %9 = vector.load %arg6[%c0_5, %c0_6] : memref<1x24xf32, #tpu.memory_space<vmem>>, vector<1x24xf32>
    %cst_7 = arith.constant dense<0.000000e+00> : vector<24xf32>
    %10 = vector.multi_reduction <add>, %8, %cst_7 [0] : vector<16x24xf32> to vector<24xf32>
    %11 = vector.shape_cast %10 : vector<24xf32> to vector<1x24xf32>
    %12 = arith.addf %9, %11 : vector<1x24xf32>
    %c0_8 = arith.constant 0 : index
    %c0_9 = arith.constant 0 : index
    %13 = vector.load %arg6[%c0_8, %c0_9] : memref<1x24xf32, #tpu.memory_space<vmem>>, vector<1x24xf32>
    tpu.vector_store %arg6[%c0_8, %c0_9], %12 {strides = array<i32>} : memref<1x24xf32, #tpu.memory_space<vmem>>, vector<1x24xf32>,
    %c2_i32 = arith.constant 2 : i32
    %14 = arith.cmpi eq, %arg1, %c2_i32 : i32
    %15 = arith.extui %14 : i1 to i32
    %c0_i32_10 = arith.constant 0 : i32
    %16 = arith.cmpi ne, %15, %c0_i32_10 : i32
    scf.if %16 {
      %c0_11 = arith.constant 0 : index
      %c0_12 = arith.constant 0 : index
      %17 = vector.load %arg4[%c0_11, %c0_12] : memref<1x128xf32, #tpu.memory_space<vmem>>, vector<1x128xf32>
      %c0_13 = arith.constant 0 : index
      %c0_14 = arith.constant 0 : index
      %18 = vector.load %arg2[%c0_13, %c0_14] : memref<24x128xf32, #tpu.memory_space<vmem>>, vector<24x128xf32>
      %cst_15 = arith.constant dense<0.000000e+00> : vector<1x24xf32>
      %19 = tpu.matmul %17, %18, %cst_15 {dimension_numbers = #tpu.dot_dimension_numbers<[1], [1], [0], [0], [0, 0, 1, 0], [], []>} : vector<1x128xf32>, vector<24x128xf32>, vector<1x24xf32> -> vector<1x24xf32>
      %cst_16 = arith.constant 2.500000e-01 : f32
      %20 = vector.broadcast %cst_16 : f32 to vector<1x24xf32>
      %21 = arith.mulf %19, %20 : vector<1x24xf32>
      %c0_17 = arith.constant 0 : index
      %c0_18 = arith.constant 0 : index
      %22 = vector.load %arg6[%c0_17, %c0_18] : memref<1x24xf32, #tpu.memory_space<vmem>>, vector<1x24xf32>
      %cst_19 = arith.constant 8.000000e+00 : f32
      %23 = vector.broadcast %cst_19 : f32 to vector<1x24xf32>
      %24 = arith.subf %22, %23 : vector<1x24xf32>
      %cst_20 = arith.constant 9.99999997E-7 : f32
      %25 = vector.broadcast %cst_20 : f32 to vector<1x24xf32>
      %26 = arith.maximumf %24, %25 : vector<1x24xf32>
      %cst_21 = arith.constant 9.99999997E-7 : f32
      %27 = vector.broadcast %cst_21 : f32 to vector<1x24xf32>
      %28 = arith.addf %26, %27 : vector<1x24xf32>
      %29 = math.log %28 : vector<1x24xf32>
      %30 = arith.subf %29, %21 : vector<1x24xf32>
      %c0_22 = arith.constant 0 : index
      %c0_23 = arith.constant 0 : index
      %31 = vector.load %arg5[%c0_22, %c0_23] : memref<1x24xf32, #tpu.memory_space<vmem>>, vector<1x24xf32>
      tpu.vector_store %arg5[%c0_22, %c0_23], %30 {strides = array<i32>} : memref<1x24xf32, #tpu.memory_space<vmem>>, vector<1x24xf32>,
    } else {
    }
    return
  }
  func.func @transform_0(%arg0: i32, %arg1: i32) -> (i32, i32) {
    %c0_i32 = arith.constant 0 : i32
    %c0_i32_0 = arith.constant 0 : i32
    return %arg0, %c0_i32 : i32, i32
  }
  func.func @transform_1(%arg0: i32, %arg1: i32) -> (i32, i32) {
    %c0_i32 = arith.constant 0 : i32
    %c0_i32_0 = arith.constant 0 : i32
    return %arg1, %c0_i32 : i32, i32
  }
  func.func @transform_2(%arg0: i32, %arg1: i32) -> (i32, i32) {
    %c0_i32 = arith.constant 0 : i32
    %c0_i32_0 = arith.constant 0 : i32
    %c0_i32_1 = arith.constant 0 : i32
    return %c0_i32, %c0_i32_0 : i32, i32
  }
  func.func @transform_3(%arg0: i32, %arg1: i32) -> (i32, i32) {
    %c0_i32 = arith.constant 0 : i32
    %c0_i32_0 = arith.constant 0 : i32
    return %c0_i32, %arg0 : i32, i32
  }
}

</mosaic_0001>

<bundles_post_ra>
// kernel: tpu_custom_call.1
= control target key start
LH: loop header
LB: loop body
LE: loop exit
PB: predicated region body
PF: predicated region fallthrough
CT: control target
= control target key end

     0   :  { %8 = vsyncpa [#allocation4], 0  ;;  %s1002_s0 = inlined_call_operand.hbm [shape: f32[24,128], index: 0, kind: input, shape index: {}]   ;;  %s1003_s1 = inlined_call_operand.hbm [shape: f32[48,128], index: 1, kind: input, shape index: {}]   ;;  %s1004_s2 = inlined_call_operand.vmem [shape: f32[1,128], index: 2, kind: input, shape index: {}]   ;;  %s1005_s3 = inlined_call_operand.hbm [shape: f32[1,24], index: 3, kind: output, shape index: {}]  }
   0x1   :  { %9 = vsyncpa [#allocation7], 0 }
   0x2   :  { %11 = vsyncpa [#allocation7 + $0x1], 0 }
   0x3   :  { %12 = vsyncpa [#allocation5], 0  ;;  %s806_s12 = smov 0   ;;  %s808_s13 = smov 0  }
   0x4   :  { %s810_s14 = smov 0   ;;  %s812_s15 = smov 0  }
   0x5   :  { %s814_s16 = smov 0   ;;  %s816_s17 = smov 0  }
   0x6 LB: > { %s496_s18 = sadd.s32 4294967295, %s775_s17   ;;  %p76_p0 = scmp.ne.s32.totalorder %s759_s13, %s755_s12  ;;  %s775_s17 = sphi %s816_s17, %s18_s17   ;;  %s771_s16 = sphi %s814_s16, %s1023_s16   ;;  %s767_s15 = sphi %s812_s15, %s1022_s15   ;;  %s763_s14 = sphi %s810_s14, %s1021_s14   ;;  %s759_s13 = sphi %s808_s13, %s1020_s13   ;;  %s755_s12 = sphi %s806_s12, %s1019_s12  }
   0x7   : > { %p838_p1 = scmp.eq.s32.totalorder %s496_s18, 0  ;;  %p497_p2 = scmp.ge.s32.totalorder %s775_s17, 1 }
   0x8   : > { %p134_p3 = scmp.lt.s32.totalorder %s775_s17, 4  ;;  %s777_s22 = smov [#allocation3]  }
   0x9   : > { %s1010_s19 = scalar_select %p838_p1, 1, 0 }
   0xa   : > { %p846_p4 = por %p838_p1, %p76_p0  ;;  %p850_p5 = pnand %p497_p2, %p134_p3 }
   0xb   : > { %s149_s23 = sshll.u32 %s777_s22, 4  ;;  %s27_s25 = sadd.s32 1, %s771_s16  ;;  %s150_s23 = int_to_ptr.vmem [resolvable:$true] %s149_s23 }
   0xc   : > { %s1011_s20 = scalar_select %p846_p4, 1, 0 }
   0xd   : > { %s1012_s21 = scalar_select %p850_p5, 1, 0 }
   0xe   : > { %p558_p6 = pneg %p850_p5  ;;  %s633_s28 = scalar_lea.hbm %s1002_s0, 384 }
   0xf   : > { %p634_p8 = scmp.ne.s32.totalorder %s1002_s0, %s633_s28  ;;  %p640_p12 = scmp.lt.u32.totalorder %s633_s28, %s1002_s0 }
  0x10   : > { %p858_p7 = pnand %p558_p6, %p838_p1 }
  0x12   : > { %p635_p9 = pneg %p858_p7 }
  0x14   : > { %p636_p10 = pnand %p635_p9, %p634_p8 }
  0x16   : > { %p637_p11 = pneg %p636_p10 }
  0x18   : > { %p642_p13 = pnand %p640_p12, %p637_p11 }
  0x1a   : > { %645 = shalt.err (!%p642_p13)
}
  0x1b   : > { %s646_s6 = scalar_lea.vmem %s150_s23, 384  ;;  %p654_p6 = scmp.lt.s32.totalorder %s150_s23, %s150_s23 }
  0x1c   : > { %p647_p0 = scmp.ne.s32.totalorder %s150_s23, %s646_s6  ;;  %p655_p4 = scmp.lt.s32.totalorder %s646_s6, %s646_s6 }
  0x1e   : > { %p649_p2 = pnand %p647_p0, %p635_p9  ;;  %p656_p1 = por %p655_p4, %p654_p6 }
  0x20   : > { %p650_p3 = pneg %p649_p2 }
  0x22   : > { %p657_p5 = pnand %p656_p1, %p650_p3 }
  0x24   : > { %660 = shalt.err (!%p657_p5)
}
  0x25   : > { %s778_s7 = smov 128   ;;  %s779_s8 = smov 8  }
  0x26   : > { %561 = dma.hbm_to_vmem [thread:$0]  (!%p858_p7), %s1002_s0, 384, %s150_s23, [#allocation4], %s778_s7, %s778_s7, %s779_s8  }
  0x27   : > { %p28_p1 = scmp.ge.s32.totalorder %s27_s25, 3  ;;  %s63_s11 = sadd.s32 1, %s763_s14 }
  0x28   : > { %p70_p4 = scmp.ne.s32.totalorder %s763_s14, %s759_s13  ;;  %p71_p5 = scmp.eq.s32.totalorder %s775_s17, 0 }
  0x29   : > { %s1025_s25 = smov (%p28_p1, %s27_s25), 0  ;;  %p567_p9 = scmp.lt.s32.totalorder %s775_s17, 3 }
  0x2a   : > { %p72_p8 = por %p71_p5, %p70_p4  ;;  %s60_s12 = ssub.s32 %s771_s16, %s1025_s25 }
  0x2b   : > { %s166_s22 = sand.u32 1, %s763_s14   ;;  %p61_p10 = scmp.eq.s32.totalorder %s60_s12, 0 }
  0x2c   : > { %s500_s24 = sshll.u32 %s166_s22, 4  ;;  %s513_s26 = sshll.u32 %s771_s16, 8 }
  0x2d   : > { %s894_s27 = scalar_select %p61_p10, %s763_s14, %s63_s11  }
  0x2e   : > { %s899_s23 = scalar_lea.hbm %s1003_s1, %s513_s26  ;;  %s170_s30 = scalar_lea.vmem [#allocation6], %s500_s24 }
  0x2f   : > { %s177_s4 = sshll.u32 %s170_s30, 4  ;;  %p901_p7 = pnand %p567_p9, %p72_p8  ;;  %s905_s4 = int_to_ptr.vmem [resolvable:$true] %s177_s4 }
  0x30   : > { %s907_s6 = scalar_lea.sflag [#allocation7], %s166_s22  ;;  %s661_s9 = scalar_lea.hbm %s899_s23, 256 }
  0x31   : > { %p662_p11 = scmp.ne.s32.totalorder %s899_s23, %s661_s9  ;;  %p663_p12 = pneg %p901_p7 }
  0x32   : > { %s666_s12 = scalar_lea.hbm %s1003_s1, 768  ;;  %p667_p2 = scmp.lt.u32.totalorder %s899_s23, %s1003_s1 }
  0x33   : > { %p664_p13 = pnand %p663_p12, %p662_p11  ;;  %p668_p3 = scmp.lt.u32.totalorder %s666_s12, %s661_s9 }
  0x34   : > { %p670_p1 = scmp.lt.u32.totalorder %s661_s9, %s899_s23 }
  0x35   : > { %p665_p0 = pneg %p664_p13  ;;  %p669_p6 = por %p668_p3, %p667_p2 }
  0x37   : > { %p671_p4 = por %p670_p1, %p669_p6 }
  0x39   : > { %p672_p5 = pnand %p671_p4, %p665_p0 }
  0x3b   : > { %675 = shalt.err (!%p672_p5)
}
  0x3c   : > { %s676_s22 = scalar_lea.vmem %s905_s4, 256  ;;  %s780_s28 = smov [#allocation6]  }
  0x3d   : > { %p677_p8 = scmp.ne.s32.totalorder %s905_s4, %s676_s22  ;;  %s681_s29 = sshll.u32 %s780_s28, 4  ;;  %s682_s29 = int_to_ptr.vmem [resolvable:$false] %s681_s29 }
  0x3e   : > { %s683_s30 = scalar_lea.vmem %s682_s29, 512  ;;  %p684_p11 = scmp.lt.s32.totalorder %s905_s4, %s682_s29 }
  0x3f   : > { %p679_p9 = pnand %p677_p8, %p663_p12  ;;  %p685_p13 = scmp.lt.s32.totalorder %s683_s30, %s676_s22 }
  0x41   : > { %p680_p10 = pneg %p679_p9  ;;  %p686_p2 = por %p685_p13, %p684_p11 }
  0x43   : > { %p687_p3 = pnand %p686_p2, %p680_p10 }
  0x45   : > { %690 = shalt.err (!%p687_p3)
}
  0x46   : > { %565 = dma.hbm_to_vmem [thread:$0]  (!%p901_p7), %s899_s23, 256, %s905_s4, %s907_s6, %s778_s7, %s778_s7, %s779_s8  }
  0x47   : > { %p1015_p12 = scmp.ne.s32.totalorder %s1012_s21, 0 }
  0x48   : > { %p1016_p0 = scmp.ne.s32.totalorder (!%p1015_p12), %s1010_s19, 0 }
  0x49   : > { %189 = sbr.rel (%p1015_p12) target bundleno = 563 (0x233), region = 32 }
  0x50   : > { %742 = dma.done.wait (%p1016_p0), [#allocation4], 384  }
  0x51   : > { %744 = vsyncadd (%p1016_p0), [#allocation4], 4294966912  ;;  %s195_s9 = sand.u32 1, %s759_s13   ;;  %p1017_p6 = scmp.ne.s32.totalorder %s1011_s20, 0 }
  0x52   : > { %s505_s5 = sshll.u32 %s195_s9, 4  ;;  %s196_s10 = scalar_lea.sflag [#allocation7], %s195_s9 }
  0x53   : > { %s199_s11 = scalar_lea.vmem [#allocation6], %s505_s5 }
  0x54   : > { %746 = dma.done.wait (%p1017_p6), %s196_s10, 256  }
  0x55   : > { %748 = vsyncadd (%p1017_p6), %s196_s10, 4294967040  ;;  %p506_p7 = scmp.ne.s32.totalorder %s767_s15, 0 }
  0x56   : > { %vm223_vm0 = vcmask (!%p506_p7), 188416   ;;  %v781_v0 = vmov (!%p506_p7), 0.0  }
  0x57   : > { %222 = sbr.rel (%p506_p7) target bundleno = 94 (0x5e), region = 44  ;;  %224 = vst.msk [vmem:[#allocation2] sm:$0x1] (!%p506_p7), %vm223_vm0, %v781_v0 }
  0x5e PF: > { %v227_v1 = vld [vmem:[#allocation3] sm:$0xff]  ;;  %v228_v2 = vld [vmem:[#allocation3 + $0x8] sm:$0xff]  ;;  %v229_v5 = vld [vmem:[#allocation3 + $0x10] sm:$0xff]  ;;  %vm312_vm1 = vcmask 195584   ;;  %vm323_vm2 = vcmask 188416   ;;  %p507_p1 = scmp.ne.s32.totalorder %s767_s15, 2 }
  0x5f   : > { %v541_v3 = vpack.c.bf16 %v228_v2, %v227_v1  ;;  %v225_v4 = vld [vmem:[%s199_s11] sm:$0xff]  ;;  %v226_v6 = vld [vmem:[%s199_s11 + $0x8] sm:$0xff]  ;;  %v782_v28 = vmov (!%p507_p1), 0.0|0.0   ;;  %vm783_vm3 = vmmov (!%p507_p1), 0   ;;  %v784_v30 = vmov (!%p507_p1), 0.0  }
  0x60   : > { %529 = vmatprep.mubr.f32.mxu0 %v225_v4  ;;  %v311_v23 = vld [vmem:[#allocation2] sm:$0x1]  ;;  %v330_v26 = vld [vmem:[#allocation3] sm:$0xff] (!%p507_p1)  ;;  %v331_v27 = vld [vmem:[#allocation3 + $0x8] sm:$0xff] (!%p507_p1) }
  0x61   : > { %542 = vmatprep.subr.bf16.mxu0 %v541_v3  ;;  %v546_v29 = vpack.c.bf16 (!%p507_p1), %v331_v27, %v330_v26  ;;  %v332_v31 = vld [vmem:[#allocation3 + $0x10] sm:$0xff] (!%p507_p1)  ;;  %v329_v32 = vld [vmem:[%s1004_s2] sm:$0x1] (!%p507_p1) }
  0x62   : > { %544 = vmatpush3.bf16.xpose.msra.mxu0 %v541_v3 }
  0x63   : > { %527 = vmatprep.subr.mxu0 %v229_v5 }
  0x6a   : > { %528 = vmatpush3.xpose.msra.mxu0 %v229_v5 }
  0x6b   : > { %545 = vmatprep.subr.bf16.mxu0 (!%p507_p1), %v782_v28 }
  0x6d   : > { %530 = vmatmul.mubr.f32.vlgmr.msra.gmra.mrb[0].mxu0 %v226_v6 }
  0x6e   : > { %538 = vmatprep.mubr.msk.f32.mxu0 (!%p507_p1), %vm783_vm3, %v784_v30  ;;  %547 = vmatpush3.bf16.xpose.msra.mxu0 (!%p507_p1), %v546_v29 }
  0x6f   : > { %536 = vmatprep.subr.mxu0 (!%p507_p1), %v784_v30 }
  0x76   : > { %537 = vmatpush3.xpose.msra.mxu0 (!%p507_p1), %v332_v31 }
 0x140   : > { %v531_v7 = vpop.f32.mrb[0].mxu0 }
 0x141   : > { %v306_v8 = vmul.f32 0.25, %v531_v7  ;;  %v296_v9 = vpop.f32.mrb[1].mxu0  ;;  %539 = vmatmul.mubr.f32.vlgmr.msra.gmra.mrb[0].mxu0 (!%p507_p1), %v329_v32 }
 0x142   : > { %v305_v10 = vmul.f32 0.25, %v296_v9 }
 0x143   : > { %v309_v11 = vmul.f32 1.442695, %v306_v8 }
 0x144   : > { %v307_v12 = vmul.f32 1.442695, %v305_v10 }
 0x145   : > { %627 = vpow2.f32 %v309_v11 }
 0x146   : > { %629 = vpow2.f32 %v307_v12 }
 0x14f   : > { %v628_v13 = vpop.eup %627 }
 0x150   : > { %v630_v14 = vpop.eup %629  ;;  %v314_v15 = vsel %vm312_vm1, %v628_v13, 0.0 }
 0x151   : > { %v313_v16 = vsel %vm312_vm1, %v630_v14, 0.0 }
 0x152   : > { %v315_v17 = vadd.f32 %v314_v15, %v313_v16 }
 0x154   : > { %v316_v18 = vrot.slane %v315_v17, 4 }
 0x156   : > { %v317_v19 = vadd.f32 %v316_v18, %v315_v17 }
 0x158   : > { %v318_v20 = vrot.slane %v317_v19, 2 }
 0x15a   : > { %v319_v21 = vadd.f32 %v318_v20, %v317_v19 }
 0x15c   : > { %v320_v22 = vrot.slane %v319_v21, 1  ;;  %328 = sbr.rel (%p507_p1) target bundleno = 538 (0x21a), region = 48 }
 0x15e   : > { %v321_v24 = vadd.f32 %v320_v22, %v319_v21 }
 0x160   : > { %v322_v25 = vadd.f32 %v321_v24, %v311_v23 }
 0x162   : > { %324 = vst.msk [vmem:[#allocation2] sm:$0x1] %vm323_vm2, %v322_v25 }
 0x169   : > { %v404_v33 = vld [vmem:[#allocation2] sm:$0x1] }
 0x16a   : > { %v508_v34 = vadd.f32 -8.0, %v404_v33 }
 0x16c   : > { %v406_v35 = vmax.f32 %v508_v34, 1e-06 }
 0x16e   : > { %v407_v36 = vadd.f32 1e-06, %v406_v35 }
 0x170   : > { %631 = vlog2.f32 %v407_v36 }
 0x17a   : > { %v632_v37 = vpop.eup %631 }
 0x17b   : > { %v409_v38 = vmul.f32 0.6931472, %v632_v37 }
 0x214   : > { %v399_v39 = vpop.f32.mrb[0].mxu0 }
 0x215   : > { %v403_v40 = vmul.f32 0.25, %v399_v39  ;;  %v540_v41 = vpop.f32.mrb[1].mxu0 }
 0x217   : > { %v410_v42 = vsub.f32 %v409_v38, %v403_v40 }
 0x219   : > { %411 = vst.msk [vmem:[#allocation8] sm:$0x1] %vm323_vm2, %v410_v42 }
 0x21a PF: > { %p958_p4 = scmp.eq.s32.totalorder %s496_s18, 2  ;;  %s785_s21 = smov [#allocation8]  }
 0x21b   : > { %s421_s7 = sshll.u32 %s785_s21, 4  ;;  %s422_s7 = int_to_ptr.vmem [resolvable:$true] %s421_s7 }
 0x21c   : > { %s691_s8 = scalar_lea.vmem %s422_s7, 16  ;;  %s697_s23 = scalar_lea.vmem %s422_s7, 32 }
 0x21d   : > { %p692_p5 = scmp.ne.s32.totalorder %s422_s7, %s691_s8  ;;  %p698_p10 = scmp.lt.s32.totalorder %s422_s7, %s422_s7 }
 0x21e   : > { %p699_p11 = scmp.lt.s32.totalorder %s697_s23, %s691_s8 }
 0x21f   : > { %p693_p8 = pnand %p692_p5, %p958_p4 }
 0x220   : > { %p700_p13 = por %p699_p11, %p698_p10 }
 0x221   : > { %p694_p9 = pneg %p693_p8 }
 0x223   : > { %p701_p2 = pnand %p700_p13, %p694_p9 }
 0x225   : > { %704 = shalt.err (!%p701_p2)
}
 0x226   : > { %s705_s6 = scalar_lea.hbm %s1005_s3, 16 }
 0x227   : > { %p706_p3 = scmp.ne.s32.totalorder %s1005_s3, %s705_s6  ;;  %p711_p6 = scmp.lt.u32.totalorder %s705_s6, %s1005_s3 }
 0x229   : > { %p707_p12 = pnand %p706_p3, %p958_p4 }
 0x22b   : > { %p708_p0 = pneg %p707_p12 }
 0x22d   : > { %p713_p7 = pnand %p711_p6, %p708_p0 }
 0x22f   : > { %716 = shalt.err (!%p713_p7)
}
 0x230   : > { %555 = dma.vmem_to_hbm [thread:$0]  (%p958_p4), %s422_s7, 16, %s1005_s3, [#allocation5]  }
 0x231   : > { %750 = dma.done.wait (%p958_p4), [#allocation5], 16  }
 0x232   : > { %752 = vsyncadd (%p958_p4), [#allocation5], 4294967280 }
 0x233 PF: > { %s18_s17 = sadd.s32 1, %s775_s17   ;;  %s1019_s12 = smov %s759_s13 }
 0x234   : > { %p15_p1 = scmp.ge.s32.totalorder %s18_s17, 5   ;;  %s1020_s13 = smov %s763_s14 }
 0x235   : > { %s1021_s14 = smov %s894_s27  ;;  %s1022_s15 = smov %s771_s16 }
 0x236   : > { %s1023_s16 = smov %s1025_s25  ;;  %17 = sbr.rel (!%p15_p1) target bundleno = 6 (0x6), region = 84 }
 0x23d   :  { %434 = vsyncpa [#allocation4], 1 }
 0x23e   :  { %436 = vsyncpa [#allocation4 + $0x1], 1 }
 0x23f   :  { %437 = vsyncpa [#allocation7], 1 }
 0x240   :  { %439 = vsyncpa [#allocation7 + $0x1], 1 }
 0x241   :  { %440 = vsyncpa [#allocation5], 1 }
 0x242   :  { %442 = vsyncpa [#allocation5 + $0x1], 1 }

</bundles_post_ra>
